<compile_context>
chip_gen: v5e
topology: v5e:2x2
jax: 0.10.0
libtpu: 0.0.40
codegen_flags: <defaults>
</compile_context>

<pallas_src>
import functools

import jax
import jax.numpy as jnp
from jax.experimental import pallas as pl
from jax.experimental.pallas import tpu as pltpu

LANE = 128


def _round_up(x, m):
    return (x + m - 1) // m * m


def _pick_batch_tile(b, sublane, max_tile):
    """Batch tile: >= 2 grid steps whenever possible (v7x dual-TC + pipelining),
    sublane-aligned, capped by the per-generation max tile."""
    if b <= sublane:
        return b                                   # one small block (== full array dim)
    return min(max_tile, _round_up(pl.cdiv(b, 2), sublane))


def _mlp_head_kernel(x_ref, w1_ref, b1_ref, w2_ref, b2_ref, o_ref):
    # x_ref : (tm, D)  CLS features (f32 or bf16)
    # w1_ref: (D, H)   bf16, pre-transposed (in, out)
    # b1_ref: (1, H)   f32
    # w2_ref: (H, Cp)  bf16, pre-transposed + class dim lane-padded
    # b2_ref: (1, Cp)  f32
    # o_ref : (tm, Cp) f32
    x = x_ref[...].astype(jnp.bfloat16)
    h = jnp.dot(x, w1_ref[...], preferred_element_type=jnp.float32) + b1_ref[...]
    h = jnp.maximum(h, 0.0)                        # ReLU after layer 1
    o = jnp.dot(h.astype(jnp.bfloat16), w2_ref[...],
                preferred_element_type=jnp.float32) + b2_ref[...]
    o = jnp.maximum(o, 0.0)                        # DynamicMLP ReLUs the final Linear too
    # TODO(synk): nn.Dropout(0.1) is identity in eval mode; training-mode dropout not implemented.
    o_ref[...] = o.astype(o_ref.dtype)


def prepare_params(w1, b1, w2, b2, *, weight_dtype=jnp.bfloat16):
    """One-time conversion from PyTorch nn.Linear layout to the kernel layout.

    Done at parameter init/load time, NOT per forward call:
      * pre-transpose weights to (in, out) so both matmuls are row-major MXU dots,
      * zero-pad the class dim up to a multiple of 128 lanes (lane-dense output store),
      * cast weights to bf16 (f32 accumulation happens inside the kernel).
    """
    hidden, vision_width = w1.shape
    n_classes = w2.shape[0]
    c_pad = _round_up(n_classes, LANE)

    w1_t = jnp.asarray(w1.T, dtype=weight_dtype)                           # (D, H)
    w2_t = jnp.zeros((hidden, c_pad), weight_dtype).at[:, :n_classes].set(
        jnp.asarray(w2.T, weight_dtype))                                   # (H, Cp)
    b1_r = jnp.asarray(b1, jnp.float32).reshape(1, hidden)                 # (1, H)
    b2_r = jnp.zeros((1, c_pad), jnp.float32).at[0, :n_classes].set(
        jnp.asarray(b2, jnp.float32))                                      # (1, Cp)
    return {"w1t": w1_t, "b1": b1_r, "w2t": w2_t, "b2": b2_r}


@functools.partial(jax.jit, static_argnames=("n_classes",))
def image_classifier_forward(x, params, *, n_classes):
    """x: (B, S, D) or already-extracted (B, D); params from prepare_params.
    Returns logits (B, n_classes) float32."""
    w1t, b1, w2t, b2 = params["w1t"], params["b1"], params["w2t"], params["b2"]

    # CLS token as a cheap 2-D slice fused into this jit (no 8-row slab over-fetch;
    # the kernel DMAs exactly the bytes it consumes).
    x0 = x[:, 0, :] if x.ndim == 3 else x
    B, D = x0.shape
    H = w1t.shape[1]
    Cp = w2t.shape[1]

    # Per-generation sizing: bigger tiles / higher VMEM cap on 128 MiB parts (v5e/v6e),
    # tighter budget on 64 MiB parts (v7x).
    try:
        vmem_cap = pltpu.get_tpu_info().vmem_capacity_bytes
    except Exception:  # conservative fallback: assume smallest VMEM (v7x-like)
        vmem_cap = 64 * 1024 * 1024
    max_tile = 1024 if vmem_cap >= 100 * 1024 * 1024 else 512

    sublane = 16 if x0.dtype == jnp.bfloat16 else 8
    tm = _pick_batch_tile(B, sublane, max_tile)
    grid = (pl.cdiv(B, tm),)

    cost = pl.CostEstimate(
        flops=2 * B * (D * H + H * Cp),
        transcendentals=0,
        bytes_accessed=(x0.size * x0.dtype.itemsize
                        + w1t.size * w1t.dtype.itemsize
                        + w2t.size * w2t.dtype.itemsize
                        + (b1.size + b2.size) * 4
                        + B * Cp * 4),
    )

    # VMEM budget: double-buffered activation/output tiles, single-buffered resident
    # weights/biases (pl.Buffered(1)), plus intermediates the kernel materializes.
    vmem_bytes = (2 * tm * D * x0.dtype.itemsize          # x tiles (2-deep pipeline)
                  + w1t.size * w1t.dtype.itemsize         # single-buffered weights
                  + w2t.size * w2t.dtype.itemsize
                  + (b1.size + b2.size) * 4
                  + tm * D * 2                            # bf16 cast of x
                  + tm * H * (4 + 2)                      # f32 h + bf16 cast of h
                  + 2 * tm * Cp * 4)                      # output tiles (2-deep)
    vmem_limit = int(min(max(2 * vmem_bytes, 32 * 1024 * 1024), (vmem_cap * 3) // 4))

    resident = functools.partial(pl.BlockSpec, pipeline_mode=pl.Buffered(1))

    out_padded = pl.pallas_call(
        _mlp_head_kernel,
        grid=grid,
        in_specs=[
            # Activations: batch-tiled, double-buffered by the auto-pipeliner.
            pl.BlockSpec((tm, D), lambda i: (i, 0)),
            # Weights / biases: constant block index -> resident; single-buffered.
            resident((D, H), lambda i: (0, 0)),
            resident((1, H), lambda i: (0, 0)),
            resident((H, Cp), lambda i: (0, 0)),
            resident((1, Cp), lambda i: (0, 0)),
        ],
        out_specs=pl.BlockSpec((tm, Cp), lambda i: (i, 0)),
        out_shape=jax.ShapeDtypeStruct((B, Cp), jnp.float32),
        compiler_params=pltpu.CompilerParams(
            dimension_semantics=("parallel",),
            vmem_limit_bytes=vmem_limit),
        cost_estimate=cost,
    )(x0, w1t, b1, w2t, b2)

    return out_padded[:, :n_classes]


def init_pytorch_params(key, vision_width, n_classes):
    """Deterministic init mimicking nn.Linear defaults, in PyTorch (out, in) layout."""
    hidden = vision_width * 2
    k1, k2, k3, k4 = jax.random.split(key, 4)
    bound1 = 1.0 / jnp.sqrt(vision_width)
    bound2 = 1.0 / jnp.sqrt(hidden)
    w1 = jax.random.uniform(k1, (hidden, vision_width), jnp.float32, -bound1, bound1)
    b1 = jax.random.uniform(k2, (hidden,), jnp.float32, -bound1, bound1)
    w2 = jax.random.uniform(k3, (n_classes, hidden), jnp.float32, -bound2, bound2)
    b2 = jax.random.uniform(k4, (n_classes,), jnp.float32, -bound2, bound2)
    return w1, b1, w2, b2


if __name__ == "__main__":
    # Small shapes consistent with the module: vision_width=32, classifier_depth=2, n_classes=2.
    B, S, D, C = 2, 8, 32, 2
    key = jax.random.PRNGKey(0)
    kx, kx2, kp = jax.random.split(key, 3)
    x = jax.random.normal(kx, (B, S, D), jnp.float32)

    w1, b1, w2, b2 = init_pytorch_params(kp, D, C)
    params = prepare_params(w1, b1, w2, b2)          # one-time layout/dtype conversion

    def torch_ref(xin):
        # Eval-mode PyTorch semantics in full f32 (ReLU after both Linears, dropout=identity).
        x0 = xin[:, 0]
        return jnp.maximum(jnp.maximum(x0 @ w1.T + b1, 0.0) @ w2.T + b2, 0.0)

    out = jax.block_until_ready(image_classifier_forward(x, params, n_classes=C))
    ref = torch_ref(x)
    assert out.shape == (B, C)
    # bf16 matmul inputs with f32 accumulation -> bf16-level tolerance.
    assert jnp.allclose(out, ref, atol=5e-2, rtol=5e-2), float(jnp.max(jnp.abs(out - ref)))

    # Second config: exercises the multi-step "parallel" grid and a ragged last block.
    B2 = 20
    x2 = jax.random.normal(kx2, (B2, S, D), jnp.float32)
    out2 = jax.block_until_ready(image_classifier_forward(x2, params, n_classes=C))
    ref2 = torch_ref(x2)
    assert out2.shape == (B2, C)
    assert jnp.allclose(out2, ref2, atol=5e-2, rtol=5e-2), float(jnp.max(jnp.abs(out2 - ref2)))

    print("KERNEL_OK")
</pallas_src>

<mosaic_0001>
module attributes {stable_mosaic.version = 11 : i64} {
  func.func @_mlp_head_kernel(%arg0: i32, %arg1: memref<2x32xf32, #tpu.memory_space<vmem>>, %arg2: memref<32x64xbf16, #tpu.memory_space<vmem>>, %arg3: memref<1x64xf32, #tpu.memory_space<vmem>>, %arg4: memref<64x128xbf16, #tpu.memory_space<vmem>>, %arg5: memref<1x128xf32, #tpu.memory_space<vmem>>, %arg6: memref<2x128xf32, #tpu.memory_space<vmem>>) attributes {dimension_semantics = [#tpu.dimension_semantics<parallel>], iteration_bounds = array<i64: 1>, scalar_prefetch = 0 : i64, scratch_operands = 0 : i64, tpu.core_type = #tpu.core_type<tc>, window_params = [{transform_indices = @transform_0, window_bounds = array<i64: 2, 32>}, {pipeline_mode = #tpu.pipeline_mode<synchronous>, transform_indices = @transform_1, window_bounds = array<i64: 32, 64>}, {pipeline_mode = #tpu.pipeline_mode<synchronous>, transform_indices = @transform_2, window_bounds = array<i64: 1, 64>}, {pipeline_mode = #tpu.pipeline_mode<synchronous>, transform_indices = @transform_3, window_bounds = array<i64: 64, 128>}, {pipeline_mode = #tpu.pipeline_mode<synchronous>, transform_indices = @transform_4, window_bounds = array<i64: 1, 128>}, {transform_indices = @transform_5, window_bounds = array<i64: 2, 128>}]} {
    %c0 = arith.constant 0 : index
    %c0_0 = arith.constant 0 : index
    %0 = vector.load %arg1[%c0, %c0_0] : memref<2x32xf32, #tpu.memory_space<vmem>>, vector<2x32xf32>
    %1 = arith.truncf %0 : vector<2x32xf32> to vector<2x32xbf16>
    %c0_1 = arith.constant 0 : index
    %c0_2 = arith.constant 0 : index
    %2 = vector.load %arg2[%c0_1, %c0_2] : memref<32x64xbf16, #tpu.memory_space<vmem>>, vector<32x64xbf16>
    %cst = arith.constant dense<0.000000e+00> : vector<2x64xf32>
    %3 = tpu.matmul %1, %2, %cst {dimension_numbers = #tpu.dot_dimension_numbers<[1], [0], [0], [1], [0, 0, 1, 1], [], []>} : vector<2x32xbf16>, vector<32x64xbf16>, vector<2x64xf32> -> vector<2x64xf32>
    %c0_3 = arith.constant 0 : index
    %c0_4 = arith.constant 0 : index
    %4 = vector.load %arg3[%c0_3, %c0_4] : memref<1x64xf32, #tpu.memory_space<vmem>>, vector<1x64xf32>
    %5 = vector.broadcast %4 : vector<1x64xf32> to vector<2x64xf32>
    %6 = arith.addf %3, %5 : vector<2x64xf32>
    %cst_5 = arith.constant 0.000000e+00 : f32
    %7 = vector.broadcast %cst_5 : f32 to vector<2x64xf32>
    %8 = arith.maximumf %6, %7 : vector<2x64xf32>
    %9 = arith.truncf %8 : vector<2x64xf32> to vector<2x64xbf16>
    %c0_6 = arith.constant 0 : index
    %c0_7 = arith.constant 0 : index
    %10 = vector.load %arg4[%c0_6, %c0_7] : memref<64x128xbf16, #tpu.memory_space<vmem>>, vector<64x128xbf16>
    %cst_8 = arith.constant dense<0.000000e+00> : vector<2x128xf32>
    %11 = tpu.matmul %9, %10, %cst_8 {dimension_numbers = #tpu.dot_dimension_numbers<[1], [0], [0], [1], [0, 0, 1, 1], [], []>} : vector<2x64xbf16>, vector<64x128xbf16>, vector<2x128xf32> -> vector<2x128xf32>
    %c0_9 = arith.constant 0 : index
    %c0_10 = arith.constant 0 : index
    %12 = vector.load %arg5[%c0_9, %c0_10] : memref<1x128xf32, #tpu.memory_space<vmem>>, vector<1x128xf32>
    %13 = vector.broadcast %12 : vector<1x128xf32> to vector<2x128xf32>
    %14 = arith.addf %11, %13 : vector<2x128xf32>
    %cst_11 = arith.constant 0.000000e+00 : f32
    %15 = vector.broadcast %cst_11 : f32 to vector<2x128xf32>
    %16 = arith.maximumf %14, %15 : vector<2x128xf32>
    %c0_12 = arith.constant 0 : index
    %c0_13 = arith.constant 0 : index
    %17 = vector.load %arg6[%c0_12, %c0_13] : memref<2x128xf32, #tpu.memory_space<vmem>>, vector<2x128xf32>
    tpu.vector_store %arg6[%c0_12, %c0_13], %16 {strides = array<i32>} : memref<2x128xf32, #tpu.memory_space<vmem>>, vector<2x128xf32>,
    return
  }
  func.func @transform_0(%arg0: i32) -> (i32, i32) {
    %c0_i32 = arith.constant 0 : i32
    %c0_i32_0 = arith.constant 0 : i32
    return %arg0, %c0_i32 : i32, i32
  }
  func.func @transform_1(%arg0: i32) -> (i32, i32) {
    %c0_i32 = arith.constant 0 : i32
    %c0_i32_0 = arith.constant 0 : i32
    %c0_i32_1 = arith.constant 0 : i32
    return %c0_i32, %c0_i32_0 : i32, i32
  }
  func.func @transform_2(%arg0: i32) -> (i32, i32) {
    %c0_i32 = arith.constant 0 : i32
    %c0_i32_0 = arith.constant 0 : i32
    %c0_i32_1 = arith.constant 0 : i32
    return %c0_i32, %c0_i32_0 : i32, i32
  }
  func.func @transform_3(%arg0: i32) -> (i32, i32) {
    %c0_i32 = arith.constant 0 : i32
    %c0_i32_0 = arith.constant 0 : i32
    %c0_i32_1 = arith.constant 0 : i32
    return %c0_i32, %c0_i32_0 : i32, i32
  }
  func.func @transform_4(%arg0: i32) -> (i32, i32) {
    %c0_i32 = arith.constant 0 : i32
    %c0_i32_0 = arith.constant 0 : i32
    %c0_i32_1 = arith.constant 0 : i32
    return %c0_i32, %c0_i32_0 : i32, i32
  }
  func.func @transform_5(%arg0: i32) -> (i32, i32) {
    %c0_i32 = arith.constant 0 : i32
    %c0_i32_0 = arith.constant 0 : i32
    return %arg0, %c0_i32 : i32, i32
  }
}

</mosaic_0001>

<bundles_post_ra>
// kernel: image_classifier_forward.1
= control target key start
LH: loop header
LB: loop body
LE: loop exit
PB: predicated region body
PF: predicated region fallthrough
CT: control target
= control target key end

     0   :  { %10 = vsyncpa [#allocation3], 0  ;;  %s338_s0 = inlined_call_operand.vmem [shape: f32[2,32], index: 0, kind: input, shape index: {}]   ;;  %s339_s1 = inlined_call_operand.hbm [shape: bf16[32,64], index: 1, kind: input, shape index: {}]   ;;  %s340_s2 = inlined_call_operand.vmem [shape: f32[1,64], index: 2, kind: input, shape index: {}]   ;;  %s341_s3 = inlined_call_operand.hbm [shape: bf16[64,128], index: 3, kind: input, shape index: {}]   ;;  %s342_s4 = inlined_call_operand.vmem [shape: f32[1,128], index: 4, kind: input, shape index: {}]   ;;  %s343_s5 = inlined_call_operand.hbm [shape: f32[2,128], index: 5, kind: output, shape index: {}]  }
   0x1   :  { %11 = vsyncpa [#allocation6], 0 }
   0x2   :  { %12 = vsyncpa [#allocation4], 0  ;;  %s19_s20 = sshll.u32 %s339_s1, 4  ;;  %s285_s21 = smov [#allocation2]   ;;  %s20_s20 = int_to_ptr.hbm [resolvable:$true] %s19_s20 }
   0x3   :  { %s21_s22 = sshll.u32 %s285_s21, 4  ;;  %s34_s25 = sshll.u32 %s341_s3, 4  ;;  %s22_s22 = int_to_ptr.vmem [resolvable:$true] %s21_s22  ;;  %s35_s25 = int_to_ptr.hbm [resolvable:$true] %s34_s25 }
   0x4   :  { %s286_s26 = smov 64   ;;  %s287_s27 = smov 4  }
   0x5   :  { %27 = dma.hbm_to_vmem [thread:$0]  %s20_s20, 256, %s22_s22, [#allocation3], %s286_s26, %s286_s26, %s287_s27  }
   0x6   :  { %s288_s28 = smov [#allocation5]  }
   0x7   :  { %s36_s29 = sshll.u32 %s288_s28, 4  ;;  %s37_s29 = int_to_ptr.vmem [resolvable:$true] %s36_s29 }
   0x8   :  { %42 = dma.hbm_to_vmem [thread:$0]  %s35_s25, 512, %s37_s29, [#allocation6], %s286_s26, %s286_s26, %s287_s27  }
   0x9   :  { %279 = dma.done.wait [#allocation3], 256  }
   0xa   :  { %280 = vsyncadd [#allocation3], 4294967040 }
   0xb   :  { %281 = dma.done.wait [#allocation6], 512  }
   0xc   :  { %282 = vsyncadd [#allocation6], 4294966784  ;;  %v195_v0 = vld [vmem:[#allocation2 + $0x8] sm:$0xff]  ;;  %v194_v2 = vld [vmem:[#allocation2] sm:$0xff]  ;;  %vm76_vm0 = vcmask 261120   ;;  %vm131_vm1 = vcmask 523264  }
   0xd   :  { %v199_v1 = vld [vmem:[#allocation5 + $0x18] sm:$0xff]  ;;  %86 = vmatpush.bf16.msra.mxu0 %v195_v0  ;;  %v54_v3 = vld [vmem:[%s338_s0] sm:$0x3]  ;;  %v197_v6 = vld [vmem:[#allocation5 + $0x8] sm:$0xff]  ;;  %s289_s8 = smov [#allocation7]   ;;  %s157_s12 = sshll.u32 %s343_s5, 4  ;;  %s158_s12 = int_to_ptr.hbm [resolvable:$true] %s157_s12 }
   0xe   :  { %139 = vmatpush.bf16.msra.mxu1 %v199_v1  ;;  %v198_v4 = vld [vmem:[#allocation5 + $0x10] sm:$0xff]  ;;  %v55_v5 = vpack.c.bf16 %v54_v3, %v54_v3  ;;  %v196_v7 = vld [vmem:[#allocation5] sm:$0xff]  ;;  %s155_s9 = sshll.u32 %s289_s8, 4  ;;  %s156_s9 = int_to_ptr.vmem [resolvable:$true] %s155_s9 }
   0xf   :  { %v205_v8 = vld [vmem:[%s340_s2] ss:$0 sm:$0xff] }
  0x10   :  { %v206_v14 = vld [vmem:[%s342_s4] ss:$0 sm:$0xff] }
  0x11   :  { %87 = vmatpush.bf16.msra.mxu0 %v194_v2 }
  0x12   :  { %140 = vmatpush.bf16.msra.mxu1 %v198_v4 }
  0x14   :  { %176 = vmatmul.msk.bf16.vlgmr.msra.gmra.mxu0 %vm76_vm0, %v55_v5 }
  0x16   :  { %141 = vmatpush.bf16.msra.mxu1 %v197_v6 }
  0x1a   :  { %142 = vmatpush.bf16.msra.mxu1 %v196_v7 }
  0x91   :  { %v89_v9 = vpop.f32.mrf.mxu0 }
  0x92   :  { %v90_v10 = vadd.f32 %v205_v8, %v89_v9 }
  0x94   :  { %v93_v11 = vmax.f32 %v90_v10, 0.0 }
  0x96   :  { %v94_v12 = vpack.c.bf16 %v93_v11, %v93_v11 }
  0x98   :  { %193 = vmatmul.msk.bf16.vlgmr.msra.gmra.mxu1 %vm131_vm1, %v94_v12 }
  0x99   :  { %v91_v13 = vpop.f32.mrf.mxu0 }
 0x115   :  { %v144_v15 = vpop.f32.mrf.mxu1 }
 0x116   :  { %v145_v16 = vadd.f32 %v206_v14, %v144_v15 }
 0x118   :  { %v148_v17 = vmax.f32 %v145_v16, 0.0 }
 0x11a   :  { %149 = vst [vmem:[#allocation7] sm:$0x3] %v148_v17 }
 0x11b   :  { %160 = dma.vmem_to_hbm [thread:$0]  %s156_s9, 32, %s158_s12, [#allocation4]  }
 0x11d   :  { %v146_v18 = vpop.f32.mrf.mxu1 }
 0x11e   :  { %283 = dma.done.wait [#allocation4], 32  }
 0x11f   :  { %284 = vsyncadd [#allocation4], 4294967264 }
 0x120   :  { %165 = vsyncpa [#allocation3], 1 }
 0x121   :  { %166 = vsyncpa [#allocation6], 1 }
 0x122   :  { %167 = vsyncpa [#allocation4], 1 }

</bundles_post_ra>
